<compile_context>
chip_gen: v5e
topology: v5e:2x2
jax: 0.10.0
libtpu: 0.0.40
codegen_flags: <defaults>
</compile_context>

<pallas_src>
import functools

import jax
import jax.numpy as jnp
from jax import lax
from jax.experimental import pallas as pl
from jax.experimental.pallas import tpu as pltpu


def _gelu_exact(x):
    # matches torch.nn.GELU() default (erf formulation), computed in f32
    return 0.5 * x * (1.0 + lax.erf(x * 0.7071067811865476))


def _round_up(v, m):
    return (v + m - 1) // m * m


# --------------------------------------------------------------------------- #
# Kernel: encoder + seq pooling
# --------------------------------------------------------------------------- #
def _encoder_pool_kernel(x_ref, w1_ref, b1_ref, w2_ref, b2_ref, psum_ref,
                         *, seq_len, tile_m):
    """One (tile_m, H) seq tile of one batch row.

    enc = GELU(x @ w1 + b1) @ w2 + b2    (bf16 MXU inputs, f32 accumulation)
    accumulated into the (8, H) partial-sum output block, which stays resident
    across the seq-tile ("arbitrary") grid axis.
    """
    k = pl.program_id(1)
    nk = pl.num_programs(1)

    @pl.when(k == 0)
    def _init():
        psum_ref[...] = jnp.zeros_like(psum_ref)

    # ---- encoder: Linear -> GELU -> (Dropout = identity in eval) -> Linear ----
    x = x_ref[0].astype(jnp.bfloat16)          # cast in-body: no wrapper HBM pass
    h = jnp.dot(x, w1_ref[...], preferred_element_type=jnp.float32) + b1_ref[...]
    h = _gelu_exact(h)
    enc = jnp.dot(h.astype(jnp.bfloat16), w2_ref[...],
                  preferred_element_type=jnp.float32) + b2_ref[...]   # (tile_m, H) f32

    def accumulate(e):
        # collapse only to 8 sublanes (vreg-aligned read-modify-write); the
        # final 8 -> 1 reduction happens once, outside the kernel.
        psum_ref[0] = psum_ref[0] + jnp.sum(
            e.reshape(tile_m // 8, 8, e.shape[-1]), axis=0)

    if seq_len % tile_m != 0:          # static: only emit mask path when ragged
        @pl.when(k < nk - 1)
        def _full_tiles():
            accumulate(enc)

        @pl.when(k == nk - 1)          # mask applied on the partial last tile only
        def _last_tile():
            row = k * tile_m + lax.broadcasted_iota(jnp.int32, (tile_m, 1), 0)
            accumulate(jnp.where(row < seq_len, enc, 0.0))
    else:
        accumulate(enc)


# --------------------------------------------------------------------------- #
# Generation-aware tiling / VMEM budget
# --------------------------------------------------------------------------- #
def _vmem_budget_bytes():
    """75% of physical VMEM (v5e/v6e -> ~96 MiB, v7x -> ~48 MiB); 48 MiB fallback."""
    try:
        phys = int(pltpu.get_tpu_info().vmem_capacity_bytes)
        if phys <= 0:
            raise ValueError
    except Exception:
        phys = 64 * 1024 * 1024        # conservative: assume the smallest (v7x)
    return phys * 3 // 4


def _choose_tiling(S, H, x_dtype):
    """Pick (tile_m, vmem_limit) from the residency math:

       resident  ~ 4*H^2 (bf16 w1+w2) + biases + (8,H) output block
       per tile  ~ tile_m * H * (2 * x_bytes  [double-buffered x DMA]
                                  + ~16       [f32/bf16 h/enc temporaries])
    """
    sub = 16 if x_dtype == jnp.bfloat16 else 8     # sublane tile of the x DMA
    x_bytes = jnp.dtype(x_dtype).itemsize
    budget = _vmem_budget_bytes()

    weight_bytes = 4 * H * H + 16 * H + 2 * 8 * H * 4
    tile_m = sub
    for cand in (1024, 512, 256, 128, 64, 32, 16, 8):
        if cand % sub:
            continue
        if weight_bytes + cand * H * (2 * x_bytes + 16) <= budget:
            tile_m = cand
            break
    tile_m = max(sub, min(tile_m, _round_up(S, sub)))
    return tile_m, budget


# --------------------------------------------------------------------------- #
# Forward wrapper
# --------------------------------------------------------------------------- #
def prepare_params(params):
    """One-time weight prep (hoisted out of the per-call path): keeps everything
    in f32 and adds bf16 copies of the encoder weights for the MXU kernel."""
    p = {k: jnp.asarray(v, jnp.float32) for k, v in params.items()}
    p["w1_bf16"] = jnp.asarray(params["w1"], jnp.bfloat16)
    p["w2_bf16"] = jnp.asarray(params["w2"], jnp.bfloat16)
    return p


def causal_reward_forward(hidden_states, params, *, tile_m=None):
    """Pallas forward for CausalRewardModel (eval mode, default causal path)."""
    # TODO(synk): optional causal_outputs (intervened_states / counterfactual_encodings)
    # branch is not implemented; this covers the default path (heads on pooled).
    B, S, H = hidden_states.shape
    auto_tile_m, vmem_limit = _choose_tiling(S, H, hidden_states.dtype)
    tile_m = auto_tile_m if tile_m is None else tile_m
    num_k = pl.cdiv(S, tile_m)

    kernel = functools.partial(_encoder_pool_kernel, seq_len=S, tile_m=tile_m)

    # whole-array VMEM residents: no per-step DMA, no pipeline double-buffering
    resident = pl.BlockSpec(memory_space=pltpu.MemorySpace.VMEM)
    x_spec = pl.BlockSpec((1, tile_m, H), lambda b, k: (b, k, 0))

    # TODO(synk): if 4*H^2 bytes of encoder weights exceed the VMEM budget
    # (H >~ 3000 on v7x), keep w1/w2 in HBM (memory_space=pl.ANY) and K-tile the
    # encoder matmuls with pltpu.emit_pipeline instead of whole-array residency.
    pooled_partial = pl.pallas_call(
        kernel,
        out_shape=jax.ShapeDtypeStruct((B, 8, H), jnp.float32),
        grid=(B, num_k),
        in_specs=[x_spec] + [resident] * 4,
        out_specs=pl.BlockSpec((1, 8, H), lambda b, k: (b, 0, 0)),
        compiler_params=pltpu.CompilerParams(
            # TODO(synk): on v7x consider pltpu.CORE_PARALLEL on the batch axis
            # (or split the seq axis across cores) so both TensorCores engage
            # when B is small.
            dimension_semantics=("parallel", "arbitrary"),
            vmem_limit_bytes=int(vmem_limit)),
    )(hidden_states, params["w1_bf16"], params["b1"],
      params["w2_bf16"], params["b2"])

    # finish pooling: 8 sublane partial sums -> 1, then mean over seq
    pooled = pooled_partial.sum(axis=1) * (1.0 / S)            # (B, H) f32

    # ---- tiny M=B head / reward epilogue in plain JAX (f32) ----
    cdf = pooled @ params["wcd"] + params["bcd"]               # (B, H)
    cd = jax.nn.sigmoid(jnp.mean(cdf, axis=-1))
    it = jax.nn.sigmoid(jnp.mean(pooled @ params["wint"] + params["bint"], axis=-1))
    cf = jax.nn.sigmoid(jnp.mean(pooled @ params["wcf"] + params["bcf"], axis=-1))

    r = _gelu_exact(cdf @ params["wr1"] + params["br1"]) @ params["wr2"] + params["br2"]
    reward = r[:, 0]                                           # (B,)

    final = (reward + cd + it + cf) * 0.25
    return {"reward": final, "base_reward": reward,
            "causal_discovery": cd, "intervention": it, "counterfactual": cf}


# --------------------------------------------------------------------------- #
# Params / reference / demo
# --------------------------------------------------------------------------- #
def init_params(key, H):
    """Deterministic init mimicking torch.nn.Linear (weights stored as (in, out))."""
    def linear(k, fan_in, fan_out):
        kw, kb = jax.random.split(k)
        bound = 1.0 / (fan_in ** 0.5)
        w = jax.random.uniform(kw, (fan_in, fan_out), jnp.float32, -bound, bound)
        b = jax.random.uniform(kb, (1, fan_out), jnp.float32, -bound, bound)
        return w, b

    keys = jax.random.split(key, 7)
    p = {}
    p["w1"], p["b1"] = linear(keys[0], H, H)       # encoder layer 1
    p["w2"], p["b2"] = linear(keys[1], H, H)       # encoder layer 2
    p["wcd"], p["bcd"] = linear(keys[2], H, H)     # causal_discovery_layer
    p["wint"], p["bint"] = linear(keys[3], H, H)   # intervention_layer
    p["wcf"], p["bcf"] = linear(keys[4], H, H)     # counterfactual_layer
    p["wr1"], p["br1"] = linear(keys[5], H, H)     # reward_head layer 1
    p["wr2"], p["br2"] = linear(keys[6], H, 1)     # reward_head layer 2
    return p


def _reference_forward(hidden_states, params):
    """Plain-JAX f32 reference (mirrors the PyTorch forward in eval mode)."""
    x = hidden_states.astype(jnp.float32)
    gelu = lambda v: 0.5 * v * (1.0 + lax.erf(v * 0.7071067811865476))
    enc = gelu(x @ params["w1"] + params["b1"]) @ params["w2"] + params["b2"]
    pooled = enc.mean(axis=1)
    cdf = pooled @ params["wcd"] + params["bcd"]
    cd = jax.nn.sigmoid(cdf.mean(-1))
    it = jax.nn.sigmoid((pooled @ params["wint"] + params["bint"]).mean(-1))
    cf = jax.nn.sigmoid((pooled @ params["wcf"] + params["bcf"]).mean(-1))
    r = gelu(cdf @ params["wr1"] + params["br1"]) @ params["wr2"] + params["br2"]
    r = r[:, 0]
    final = (r + cd + it + cf) / 4.0
    return {"reward": final, "base_reward": r,
            "causal_discovery": cd, "intervention": it, "counterfactual": cf}


if __name__ == "__main__":
    B, S, H = 2, 8, 32
    key = jax.random.PRNGKey(0)
    k_x, k_p = jax.random.split(key)
    hidden_states = jax.random.normal(k_x, (B, S, H), dtype=jnp.float32)
    params = init_params(k_p, H)
    prepared = prepare_params(params)   # one-time: bf16 encoder weights

    out = causal_reward_forward(hidden_states, prepared)
    out = jax.block_until_ready(out)

    ref = _reference_forward(hidden_states, params)
    for name in ("reward", "base_reward", "causal_discovery", "intervention",
                 "counterfactual"):
        assert out[name].shape == (B,), (name, out[name].shape)
        assert jnp.allclose(out[name], ref[name], rtol=2e-2, atol=2e-2), (
            name, out[name], ref[name])

    print("KERNEL_OK")
</pallas_src>

<mosaic_0001>
module attributes {stable_mosaic.version = 11 : i64} {
  func.func @_encoder_pool_kernel(%arg0: i32, %arg1: i32, %arg2: memref<1x8x32xf32, #tpu.memory_space<vmem>>, %arg3: memref<32x32xbf16, #tpu.memory_space<vmem>>, %arg4: memref<1x32xf32, #tpu.memory_space<vmem>>, %arg5: memref<32x32xbf16, #tpu.memory_space<vmem>>, %arg6: memref<1x32xf32, #tpu.memory_space<vmem>>, %arg7: memref<1x8x32xf32, #tpu.memory_space<vmem>>) attributes {dimension_semantics = [#tpu.dimension_semantics<parallel>, #tpu.dimension_semantics<arbitrary>], iteration_bounds = array<i64: 2, 1>, scalar_prefetch = 0 : i64, scratch_operands = 0 : i64, tpu.core_type = #tpu.core_type<tc>, window_params = [{transform_indices = @transform_0, window_bounds = array<i64: 1, 8, 32>}, {pipeline_mode = #tpu.pipeline_mode<synchronous>, transform_indices = @transform_1, window_bounds = array<i64: 32, 32>}, {pipeline_mode = #tpu.pipeline_mode<synchronous>, transform_indices = @transform_2, window_bounds = array<i64: 1, 32>}, {pipeline_mode = #tpu.pipeline_mode<synchronous>, transform_indices = @transform_3, window_bounds = array<i64: 32, 32>}, {pipeline_mode = #tpu.pipeline_mode<synchronous>, transform_indices = @transform_4, window_bounds = array<i64: 1, 32>}, {transform_indices = @transform_5, window_bounds = array<i64: 1, 8, 32>}]} {
    %c0_i32 = arith.constant 0 : i32
    %0 = arith.cmpi eq, %arg1, %c0_i32 : i32
    %1 = arith.extui %0 : i1 to i32
    %c0_i32_0 = arith.constant 0 : i32
    %2 = arith.cmpi ne, %1, %c0_i32_0 : i32
    scf.if %2 {
      %cst_22 = arith.constant 0.000000e+00 : f32
      %33 = vector.broadcast %cst_22 : f32 to vector<1x8x32xf32>
      %c0_23 = arith.constant 0 : index
      %c0_24 = arith.constant 0 : index
      %c0_25 = arith.constant 0 : index
      %34 = vector.load %arg7[%c0_23, %c0_24, %c0_25] : memref<1x8x32xf32, #tpu.memory_space<vmem>>, vector<1x8x32xf32>
      tpu.vector_store %arg7[%c0_23, %c0_24, %c0_25], %33 {strides = array<i32>} : memref<1x8x32xf32, #tpu.memory_space<vmem>>, vector<1x8x32xf32>,
    } else {
    }
    %c0 = arith.constant 0 : index
    %c0_1 = arith.constant 0 : index
    %c0_2 = arith.constant 0 : index
    %3 = vector.load %arg2[%c0, %c0_1, %c0_2] : memref<1x8x32xf32, #tpu.memory_space<vmem>>, vector<1x8x32xf32>
    %4 = vector.shape_cast %3 : vector<1x8x32xf32> to vector<8x32xf32>
    %5 = arith.truncf %4 : vector<8x32xf32> to vector<8x32xbf16>
    %c0_3 = arith.constant 0 : index
    %c0_4 = arith.constant 0 : index
    %6 = vector.load %arg3[%c0_3, %c0_4] : memref<32x32xbf16, #tpu.memory_space<vmem>>, vector<32x32xbf16>
    %cst = arith.constant dense<0.000000e+00> : vector<8x32xf32>
    %7 = tpu.matmul %5, %6, %cst {dimension_numbers = #tpu.dot_dimension_numbers<[1], [0], [0], [1], [0, 0, 1, 1], [], []>} : vector<8x32xbf16>, vector<32x32xbf16>, vector<8x32xf32> -> vector<8x32xf32>
    %c0_5 = arith.constant 0 : index
    %c0_6 = arith.constant 0 : index
    %8 = vector.load %arg4[%c0_5, %c0_6] : memref<1x32xf32, #tpu.memory_space<vmem>>, vector<1x32xf32>
    %9 = vector.broadcast %8 : vector<1x32xf32> to vector<8x32xf32>
    %10 = arith.addf %7, %9 : vector<8x32xf32>
    %cst_7 = arith.constant 5.000000e-01 : f32
    %11 = vector.broadcast %cst_7 : f32 to vector<8x32xf32>
    %12 = arith.mulf %11, %10 : vector<8x32xf32>
    %cst_8 = arith.constant 0.707106769 : f32
    %13 = vector.broadcast %cst_8 : f32 to vector<8x32xf32>
    %14 = arith.mulf %10, %13 : vector<8x32xf32>
    %15 = math.erf %14 : vector<8x32xf32>
    %cst_9 = arith.constant 1.000000e+00 : f32
    %16 = vector.broadcast %cst_9 : f32 to vector<8x32xf32>
    %17 = arith.addf %16, %15 : vector<8x32xf32>
    %18 = arith.mulf %12, %17 : vector<8x32xf32>
    %19 = arith.truncf %18 : vector<8x32xf32> to vector<8x32xbf16>
    %c0_10 = arith.constant 0 : index
    %c0_11 = arith.constant 0 : index
    %20 = vector.load %arg5[%c0_10, %c0_11] : memref<32x32xbf16, #tpu.memory_space<vmem>>, vector<32x32xbf16>
    %cst_12 = arith.constant dense<0.000000e+00> : vector<8x32xf32>
    %21 = tpu.matmul %19, %20, %cst_12 {dimension_numbers = #tpu.dot_dimension_numbers<[1], [0], [0], [1], [0, 0, 1, 1], [], []>} : vector<8x32xbf16>, vector<32x32xbf16>, vector<8x32xf32> -> vector<8x32xf32>
    %c0_13 = arith.constant 0 : index
    %c0_14 = arith.constant 0 : index
    %22 = vector.load %arg6[%c0_13, %c0_14] : memref<1x32xf32, #tpu.memory_space<vmem>>, vector<1x32xf32>
    %23 = vector.broadcast %22 : vector<1x32xf32> to vector<8x32xf32>
    %24 = arith.addf %21, %23 : vector<8x32xf32>
    %c0_15 = arith.constant 0 : index
    %c0_16 = arith.constant 0 : index
    %c0_17 = arith.constant 0 : index
    %25 = vector.load %arg7[%c0_15, %c0_16, %c0_17] : memref<1x8x32xf32, #tpu.memory_space<vmem>>, vector<1x8x32xf32>
    %26 = vector.shape_cast %25 : vector<1x8x32xf32> to vector<8x32xf32>
    %27 = vector.shape_cast %24 : vector<8x32xf32> to vector<1x8x32xf32>
    %cst_18 = arith.constant dense<0.000000e+00> : vector<8x32xf32>
    %28 = vector.multi_reduction <add>, %27, %cst_18 [0] : vector<1x8x32xf32> to vector<8x32xf32>
    %29 = arith.addf %26, %28 : vector<8x32xf32>
    %c0_19 = arith.constant 0 : index
    %c0_20 = arith.constant 0 : index
    %c0_21 = arith.constant 0 : index
    %30 = vector.load %arg7[%c0_19, %c0_20, %c0_21] : memref<1x8x32xf32, #tpu.memory_space<vmem>>, vector<1x8x32xf32>
    %31 = vector.shape_cast %30 : vector<1x8x32xf32> to vector<8x32xf32>
    %32 = vector.shape_cast %29 : vector<8x32xf32> to vector<1x8x32xf32>
    tpu.vector_store %arg7[%c0_19, %c0_20, %c0_21], %32 {strides = array<i32>} : memref<1x8x32xf32, #tpu.memory_space<vmem>>, vector<1x8x32xf32>,
    return
  }
  func.func @transform_0(%arg0: i32, %arg1: i32) -> (i32, i32, i32) {
    %c0_i32 = arith.constant 0 : i32
    %c0_i32_0 = arith.constant 0 : i32
    return %arg0, %arg1, %c0_i32 : i32, i32, i32
  }
  func.func @transform_1(%arg0: i32, %arg1: i32) -> (i32, i32) {
    %c0_i32 = arith.constant 0 : i32
    %c0_i32_0 = arith.constant 0 : i32
    %c0_i32_1 = arith.constant 0 : i32
    return %c0_i32, %c0_i32_0 : i32, i32
  }
  func.func @transform_2(%arg0: i32, %arg1: i32) -> (i32, i32) {
    %c0_i32 = arith.constant 0 : i32
    %c0_i32_0 = arith.constant 0 : i32
    %c0_i32_1 = arith.constant 0 : i32
    return %c0_i32, %c0_i32_0 : i32, i32
  }
  func.func @transform_3(%arg0: i32, %arg1: i32) -> (i32, i32) {
    %c0_i32 = arith.constant 0 : i32
    %c0_i32_0 = arith.constant 0 : i32
    %c0_i32_1 = arith.constant 0 : i32
    return %c0_i32, %c0_i32_0 : i32, i32
  }
  func.func @transform_4(%arg0: i32, %arg1: i32) -> (i32, i32) {
    %c0_i32 = arith.constant 0 : i32
    %c0_i32_0 = arith.constant 0 : i32
    %c0_i32_1 = arith.constant 0 : i32
    return %c0_i32, %c0_i32_0 : i32, i32
  }
  func.func @transform_5(%arg0: i32, %arg1: i32) -> (i32, i32, i32) {
    %c0_i32 = arith.constant 0 : i32
    %c0_i32_0 = arith.constant 0 : i32
    %c0_i32_1 = arith.constant 0 : i32
    return %arg0, %c0_i32, %c0_i32_0 : i32, i32, i32
  }
}

</mosaic_0001>

<bundles_post_ra>
// kernel: tpu_custom_call.1
= control target key start
LH: loop header
LB: loop body
LE: loop exit
PB: predicated region body
PF: predicated region fallthrough
CT: control target
= control target key end

     0   :  { %10 = vsyncpa [#allocation3], 0  ;;  %s1038_s0 = inlined_call_operand.hbm [shape: f32[2,8,32], index: 0, kind: input, shape index: {}]   ;;  %s1039_s1 = inlined_call_operand.hbm [shape: bf16[32,32], index: 1, kind: input, shape index: {}]   ;;  %s1040_s2 = inlined_call_operand.vmem [shape: f32[1,32], index: 2, kind: input, shape index: {}]   ;;  %s1041_s3 = inlined_call_operand.hbm [shape: bf16[32,32], index: 3, kind: input, shape index: {}]   ;;  %s1042_s4 = inlined_call_operand.vmem [shape: f32[1,32], index: 4, kind: input, shape index: {}]   ;;  %s1043_s5 = inlined_call_operand.hbm [shape: f32[2,8,32], index: 5, kind: output, shape index: {}]  }
   0x1   :  { %12 = vsyncpa [#allocation3 + $0x1], 0 }
   0x2   :  { %13 = vsyncpa [#allocation6], 0 }
   0x3   :  { %14 = vsyncpa [#allocation4], 0 }
   0x4   :  { %16 = vsyncpa [#allocation4 + $0x1], 0  ;;  %s878_s18 = smov 0   ;;  %s880_s19 = smov 0  }
   0x5   :  { %s882_s20 = smov 0   ;;  %s884_s21 = smov 0  }
   0x6   :  { %s886_s22 = smov 0   ;;  %s888_s23 = smov 0  }
   0x7 LB: > { %s535_s24 = sadd.s32 4294967295, %s841_s23   ;;  %p537_p0 = scmp.ge.s32.totalorder %s841_s23, 1  ;;  %s841_s23 = sphi %s888_s23, %s22_s23   ;;  %s837_s22 = sphi %s886_s22, %s1053_s22   ;;  %s833_s21 = sphi %s884_s21, %s1052_s21   ;;  %s829_s20 = sphi %s882_s20, %s1051_s20   ;;  %s825_s19 = sphi %s880_s19, %s1050_s19   ;;  %s821_s18 = sphi %s878_s18, %s1049_s18  }
   0x8   : > { %p912_p1 = scmp.eq.s32.totalorder %s535_s24, 0  ;;  %p177_p2 = scmp.lt.s32.totalorder %s841_s23, 3 }
   0x9   : > { %s188_s28 = sshll.u32 %s1039_s1, 4  ;;  %s843_s30 = smov [#allocation5]   ;;  %s189_s28 = int_to_ptr.hbm [resolvable:$true] %s188_s28 }
   0xa   : > { %p920_p3 = pnand %p537_p0, %p177_p2  ;;  %s190_s6 = sshll.u32 %s843_s30, 4  ;;  %s191_s6 = int_to_ptr.vmem [resolvable:$true] %s190_s6 }
   0xb   : > { %p540_p6 = scmp.ge.s32.totalorder %s841_s23, 2  ;;  %s205_s9 = sshll.u32 %s1041_s3, 4  ;;  %s206_s9 = int_to_ptr.hbm [resolvable:$true] %s205_s9 }
   0xc   : > { %p587_p4 = pneg %p920_p3  ;;  %s844_s10 = smov 64  }
   0xd   : > { %s845_s11 = smov 4   ;;  %s846_s12 = smov [#allocation7]  }
   0xe   : > { %p588_p5 = pnand %p587_p4, %p912_p1  ;;  %s207_s13 = sshll.u32 %s846_s12, 4  ;;  %s208_s13 = int_to_ptr.vmem [resolvable:$true] %s207_s13 }
   0xf   : > { %s34_s14 = sadd.s32 1, %s837_s22  ;;  %s536_s15 = sadd.s32 4294967294, %s841_s23  }
  0x10   : > { %590 = dma.hbm_to_vmem [thread:$0]  (!%p588_p5), %s189_s28, 256, %s191_s6, [#allocation6], %s844_s10, %s844_s10, %s845_s11  }
  0x11   : > { %593 = dma.hbm_to_vmem [thread:$0]  (!%p588_p5), %s206_s9, 256, %s208_s13, [#allocation6], %s844_s10, %s844_s10, %s845_s11  }
  0x12   : > { %p36_p7 = scmp.ge.s32.totalorder %s34_s14, 2  ;;  %s43_s16 = sadd.s32 1, %s829_s20 }
  0x13   : > { %p50_p8 = scmp.ne.s32.totalorder %s829_s20, %s825_s19  ;;  %p51_p9 = scmp.eq.s32.totalorder %s841_s23, 0 }
  0x14   : > { %s1055_s14 = smov (%p36_p7, %s34_s14), 0  ;;  %p56_p10 = scmp.ne.s32.totalorder %s825_s19, %s821_s18 }
  0x15   : > { %s38_s17 = ssub.s32 %s837_s22, %s1055_s14  ;;  %p164_p11 = scmp.eq.s32.totalorder %s535_s24, 1 }
  0x16   : > { %p41_p12 = scmp.eq.s32.totalorder %s38_s17, 0  ;;  %p948_p13 = por %p912_p1, %p56_p10 }
  0x17   : > { %p952_p0 = por %p164_p11, %p50_p8  ;;  %p170_p2 = scmp.eq.s32.totalorder %s536_s15, 1 }
  0x18   : > { %s957_s28 = scalar_select %p41_p12, %s829_s20, %s43_s16  }
  0x19   : > { %p52_p4 = por %p51_p9, %p50_p8  ;;  %p959_p5 = por %p170_p2, %p56_p10 }
  0x1a   : > { %s224_s6 = sand.u32 1, %s829_s20   ;;  %s542_s24 = sshll.u32 %s837_s22, 3 }
  0x1b   : > { %p604_p7 = scmp.lt.s32.totalorder %s841_s23, 2  ;;  %s541_s7 = sshll.u32 %s224_s6, 3 }
  0x1c   : > { %s233_s10 = scalar_lea.hbm %s1038_s0, %s542_s24  ;;  %s228_s12 = scalar_lea.vmem [#allocation2], %s541_s7 }
  0x1d   : > { %s235_s11 = sshll.u32 %s233_s10, 4  ;;  %s237_s13 = sshll.u32 %s228_s12, 4  ;;  %s236_s11 = int_to_ptr.hbm [resolvable:$true] %s235_s11  ;;  %s238_s13 = int_to_ptr.vmem [resolvable:$true] %s237_s13 }
  0x1e   : > { %p595_p11 = pnand %p604_p7, %p52_p4  ;;  %s225_s15 = scalar_lea.sflag [#allocation3], %s224_s6 }
  0x1f   : > { %246 = sbr.rel (%p920_p3) target bundleno = 362 (0x16a), region = 40  ;;  %s972_s16 = sand.u32 (!%p920_p3), 1, %s825_s19  }
  0x20   : > { %597 = dma.hbm_to_vmem [thread:$0]  (!%p595_p11), %s236_s11, 128, %s238_s13, %s225_s15  }
  0x21   : > { %s544_s17 = sshll.u32 (!%p920_p3), %s972_s16, 3  ;;  %s249_s8 = scalar_lea.sflag (!%p920_p3), [#allocation3], %s972_s16 }
  0x22   : > { %s252_s24 = scalar_lea.vmem (!%p920_p3), [#allocation2], %s544_s17 }
  0x24   : > { %808 = dma.done.wait (%p948_p13), %s249_s8, 128  }
  0x25   : > { %810 = vsyncadd (%p948_p13), %s249_s8, 4294967168 }
  0x26   : > { %812 = dma.done.wait (%p912_p1), [#allocation6], 512  }
  0x27   : > { %814 = vsyncadd (%p912_p1), [#allocation6], 4294966784  ;;  %vm295_vm0 = vcmask 261120   ;;  %s984_s29 = scalar_lea.vmem [#allocation8], %s544_s17  ;;  %v847_v0 = vmov 0.0   ;;  %v572_v1 = vld [vmem:[#allocation5 + $0x8] sm:$0xff] }
  0x28   : > { %296 = vst.msk [vmem:[%s984_s29] sm:$0xff] %vm295_vm0, %v847_v0  ;;  %329 = vmatpush.bf16.msra.mxu0 %v572_v1  ;;  %v571_v2 = vld [vmem:[#allocation5] sm:$0xff]  ;;  %v297_v3 = vld [vmem:[%s252_s24] sm:$0xff]  ;;  %s568_s25 = sshll.u32 %s833_s21, 3  ;;  %s434_s13 = sshll.u32 %s984_s29, 4  ;;  %s435_s13 = int_to_ptr.vmem [resolvable:$true] %s434_s13 }
  0x29   : > { %v298_v4 = vpack.c.bf16 %v297_v3, %v297_v3  ;;  %v661_v5 = vld [vmem:[%s1040_s2] ss:$0 sm:$0xff]  ;;  %v574_v18 = vld [vmem:[#allocation7 + $0x8] sm:$0xff]  ;;  %s432_s12 = scalar_lea.hbm %s1043_s5, %s568_s25  ;;  %s422_s21 = scalar_lea.sflag [#allocation4], %s972_s16 }
  0x2a   : > { %410 = vmatpush.bf16.msra.mxu1 %v574_v18  ;;  %v573_v21 = vld [vmem:[#allocation7] sm:$0xff]  ;;  %s436_s15 = sshll.u32 %s432_s12, 4  ;;  %s775_s6 = scalar_lea.hbm %s1043_s5, 16  ;;  %s437_s15 = int_to_ptr.hbm [resolvable:$true] %s436_s15 }
  0x2b   : > { %v662_v51 = vld [vmem:[%s1042_s4] ss:$0 sm:$0xff]  ;;  %s769_s17 = sshra.s32 %s437_s15, 4  ;;  %s770_s17 = int_to_ptr.hbm [resolvable:$true] %s769_s17 }
  0x2c   : > { %330 = vmatpush.bf16.msra.mxu0 %v571_v2  ;;  %s771_s8 = scalar_lea.hbm %s770_s17, 8  ;;  %p776_p9 = scmp.lt.s32.totalorder %s770_s17, %s1043_s5 }
  0x2d   : > { %p772_p1 = scmp.ne.s32.totalorder %s770_s17, %s771_s8  ;;  %p777_p10 = scmp.lt.s32.totalorder %s775_s6, %s771_s8 }
  0x2e   : > { %411 = vmatpush.bf16.msra.mxu1 %v573_v21 }
  0x2f   : > { %556 = vmatmul.msk.bf16.vlgmr.msra.gmra.mxu0 %vm295_vm0, %v298_v4  ;;  %v417_v53 = vld [vmem:[%s984_s29] sm:$0xff]  ;;  %p773_p3 = pnand %p772_p1, %p952_p0  ;;  %p778_p12 = por %p777_p10, %p776_p9 }
  0x31   : > { %p774_p8 = pneg %p773_p3 }
  0x33   : > { %p779_p13 = pnand %p778_p12, %p774_p8 }
  0xac   : > { %v332_v6 = vpop.f32.mrf.mxu0 }
  0xad   : > { %v333_v7 = vadd.f32 %v661_v5, %v332_v6 }
  0xaf   : > { %v337_v8 = vmul.f32 0.70710677, %v333_v7  ;;  %v336_v47 = vmul.f32 0.5, %v333_v7 }
  0xb1   : > { %v338_v9 = vmul.f32 %v337_v8, %v337_v8 }
  0xb3   : > { %v339_v10 = vmin.f32 %v338_v9, 16.0 }
  0xb4   : > { %v334_v11 = vpop.f32.mrf.mxu0 }
  0xb5   : > { %v340_v12 = vmul.f32 2.1237322e-06, %v339_v10  ;;  %v351_v13 = vmul.f32 3.8918573e-05, %v339_v10 }
  0xb7   : > { %v341_v14 = vadd.f32 0.00028619796, %v340_v12  ;;  %v352_v15 = vadd.f32 0.001143296, %v351_v13 }
  0xb9   : > { %v342_v16 = vmul.f32 %v341_v14, %v339_v10  ;;  %v353_v17 = vmul.f32 %v352_v15, %v339_v10 }
  0xbb   : > { %v354_v19 = vadd.f32 0.014752088, %v353_v17  ;;  %v343_v20 = vadd.f32 0.0036580483, %v342_v16 }
  0xbd   : > { %v355_v22 = vmul.f32 %v354_v19, %v339_v10  ;;  %v344_v24 = vmul.f32 %v343_v20, %v339_v10 }
  0xbf   : > { %v356_v23 = vadd.f32 0.112945676, %v355_v22  ;;  %v345_v27 = vadd.f32 0.05243302, %v344_v24 }
  0xc1   : > { %v357_v25 = vmul.f32 %v356_v23, %v339_v10  ;;  %v346_v30 = vmul.f32 %v345_v27, %v339_v10 }
  0xc3   : > { %v358_v26 = vadd.f32 0.4994258, %v357_v25  ;;  %v347_v31 = vadd.f32 0.18741608, %v346_v30 }
  0xc5   : > { %v359_v28 = vmul.f32 %v358_v26, %v339_v10  ;;  %v348_v33 = vmul.f32 %v347_v31, %v339_v10 }
  0xc7   : > { %v360_v29 = vadd.f32 1.0, %v359_v28  ;;  %v349_v37 = vadd.f32 1.1283791, %v348_v33 }
  0xc9   : > { %663 = vrcp.f32 %v360_v29  ;;  %v372_v36 = vand.u32 2147483648, %v360_v29  ;;  %v370_v39 = vand.u32 2147483647, %v360_v29  ;;  %vm366_vm2 = vweird.f32 %v360_v29 }
  0xca   : > { %v350_v42 = vmul.f32 %v349_v37, %v337_v8 }
  0xcb   : > { %v373_v41 = vor.u32 1.1754944e-38, %v372_v36  ;;  %vm371_vm4 = vcmp.eq.f32.partialorder %v370_v39, 8.507059e+37 }
  0xcf   : > { %v664_v32 = vpop.eup %663 }
  0xd0   : > { %v362_v34 = vmul.f32 %v664_v32, %v360_v29  ;;  %vm367_vm1 = vweird.f32 %v664_v32 }
  0xd1   : > { %vm368_vm3 = vmor %vm366_vm2, %vm367_vm1 }
  0xd2   : > { %v363_v35 = vsub.f32 1.0, %v362_v34 }
  0xd4   : > { %v364_v38 = vmul.f32 %v664_v32, %v363_v35 }
  0xd6   : > { %v365_v40 = vadd.f32 %v664_v32, %v364_v38 }
  0xd8   : > { %v369_v43 = vsel %vm368_vm3, %v664_v32, %v365_v40 }
  0xd9   : > { %v374_v44 = vsel %vm371_vm4, %v373_v41, %v369_v43 }
  0xda   : > { %v375_v45 = vmul.f32 %v374_v44, %v350_v42 }
  0xdc   : > { %v557_v46 = vclamps-f32 %v375_v45, 1.0 }
  0xde   : > { %v378_v48 = vadd.f32 1.0, %v557_v46 }
  0xe0   : > { %v379_v49 = vmul.f32 %v378_v48, %v336_v47 }
  0xe2   : > { %v380_v50 = vpack.c.bf16 %v379_v49, %v379_v49 }
  0xe4   : > { %566 = vmatmul.msk.bf16.vlgmr.msra.gmra.mxu1 %vm295_vm0, %v380_v50 }
 0x161   : > { %v413_v52 = vpop.f32.mrf.mxu1 }
 0x162   : > { %v414_v54 = vadd.f32 %v662_v51, %v413_v52 }
 0x164   : > { %v419_v55 = vadd.f32 %v417_v53, %v414_v54 }
 0x166   : > { %420 = vst.msk [vmem:[%s984_s29] sm:$0xff] %vm295_vm0, %v419_v55 }
 0x167   : > { %782 = shalt.err (!%p779_p13)
}
 0x168   : > { %585 = dma.vmem_to_hbm [thread:$0]  (%p952_p0), %s435_s13, 128, %s437_s15, %s422_s21  }
 0x169   : > { %v415_v56 = vpop.f32.mrf.mxu1 }
 0x16a PF: > { %s448_s16 = sand.u32 1, %s821_s18   ;;  %p599_p2 = pnand %p540_p6, %p959_p5 }
 0x16b   : > { %s449_s29 = scalar_lea.sflag [#allocation4], %s448_s16 }
 0x16c   : > { %p600_p4 = pneg %p599_p2 }
 0x16e   : > { %816 = dma.done.wait (%p600_p4), %s449_s29, 128  }
 0x16f   : > { %818 = vsyncadd (%p600_p4), %s449_s29, 4294967168  ;;  %s22_s23 = sadd.s32 1, %s841_s23   ;;  %s1049_s18 = smov %s825_s19 }
 0x170   : > { %p19_p7 = scmp.ge.s32.totalorder %s22_s23, 4   ;;  %s1050_s19 = smov %s829_s20 }
 0x171   : > { %s1051_s20 = smov %s957_s28  ;;  %s1052_s21 = smov %s837_s22 }
 0x172   : > { %s1053_s22 = smov %s1055_s14  ;;  %21 = sbr.rel (!%p19_p7) target bundleno = 7 (0x7), region = 97 }
 0x177   :  { %455 = vsyncpa [#allocation3], 1 }
 0x178   :  { %457 = vsyncpa [#allocation3 + $0x1], 1 }
 0x179   :  { %458 = vsyncpa [#allocation6], 1 }
 0x17a   :  { %459 = vsyncpa [#allocation4], 1 }
 0x17b   :  { %461 = vsyncpa [#allocation4 + $0x1], 1 }

</bundles_post_ra>
